<compile_context>
chip_gen: v6e
topology: v6e:2x2x1
jax: 0.10.0
libtpu: 0.0.40
codegen_flags: <defaults>
</compile_context>

<pallas_src>
import math

import jax
import jax.numpy as jnp
from jax.experimental import pallas as pl
from jax.experimental.pallas import tpu as pltpu

LANE = 128


def _round_up(v, m):
    return (v + m - 1) // m * m


def _pad2d(a, rows, cols):
    r, c = a.shape
    if r == rows and c == cols:
        return a
    return jnp.pad(a, ((0, rows - r), (0, cols - c)))


def _choose_row_tile(n):
    """Row tile for streaming adj: big enough to hide DMA latency, small enough
    that a double-buffered bf16 (tm, n_pad) tile stays well inside v7x's 64 MiB
    VMEM."""
    if n <= 512:
        return _round_up(max(n, 8), 8)
    tm = 512
    while tm > 8 and 2 * tm * _round_up(n, tm) * 2 > (24 << 20):
        tm //= 2
    return tm


def _vmem_limit(block_bytes):
    # double-buffered blocks + headroom, clamped to a v7x-safe range
    total = 2 * sum(block_bytes) + (2 << 20)
    return int(min(max(total, 8 << 20), 64 << 20))


# ---------------------------------------------------------------------------
# kernels
# ---------------------------------------------------------------------------
def _support_kernel(x_ref, w_ref, o_ref):
    # S = feat @ W (f32 accumulate), stored as bf16 MXU feed for the aggregate.
    s = jnp.dot(x_ref[...], w_ref[...], preferred_element_type=jnp.float32)
    o_ref[...] = s.astype(o_ref.dtype)


def _make_aggregate_kernel(apply_relu, drop_p):
    inv_keep = 1.0 / (1.0 - drop_p) if drop_p < 1.0 else 0.0

    def kernel(adj_ref, s_ref, b_ref, *rest):
        if drop_p > 0.0:
            u_ref, o_ref = rest
        else:
            (o_ref,) = rest
        # bf16 x bf16 on the MXU, f32 accumulation.
        h = jnp.dot(adj_ref[...], s_ref[...], preferred_element_type=jnp.float32)
        h = h + b_ref[...]
        if apply_relu:
            h = jnp.maximum(h, 0.0)
        if drop_p > 0.0:
            # inverted dropout: drop with prob p, scale survivors by 1/(1-p)
            keep = u_ref[...] >= drop_p
            h = jnp.where(keep, h * inv_keep, 0.0)
        o_ref[...] = h

    return kernel


# ---------------------------------------------------------------------------
# pallas_call wrappers
# ---------------------------------------------------------------------------
def _support_matmul(feat, w, tm):
    n_pad, d_pad = feat.shape
    h_pad = w.shape[1]
    grid = (n_pad // tm,)
    blocks = [tm * d_pad * feat.dtype.itemsize, d_pad * h_pad * 4, tm * h_pad * 2]
    return pl.pallas_call(
        _support_kernel,
        grid=grid,
        in_specs=[
            pl.BlockSpec((tm, d_pad), lambda i: (i, 0)),
            pl.BlockSpec((d_pad, h_pad), lambda i: (0, 0)),
        ],
        out_specs=pl.BlockSpec((tm, h_pad), lambda i: (i, 0)),
        out_shape=jax.ShapeDtypeStruct((n_pad, h_pad), jnp.bfloat16),
        compiler_params=pltpu.CompilerParams(
            dimension_semantics=("parallel",),
            vmem_limit_bytes=_vmem_limit(blocks)),
    )(feat, w)


def _aggregate(adj_bf16, support_bf16, bias, tm, *, relu, drop_u=None, drop_p=0.0):
    n_pad = adj_bf16.shape[0]
    h_pad = support_bf16.shape[1]
    grid = (n_pad // tm,)
    has_drop = (drop_u is not None) and drop_p > 0.0

    in_specs = [
        pl.BlockSpec((tm, n_pad), lambda i: (i, 0)),      # adj row tile (bf16)
        pl.BlockSpec((n_pad, h_pad), lambda i: (0, 0)),   # full support (bf16)
        pl.BlockSpec((1, h_pad), lambda i: (0, 0)),       # bias row (f32)
    ]
    args = [adj_bf16, support_bf16, bias]
    blocks = [tm * n_pad * 2, n_pad * h_pad * 2, 8 * h_pad * 4, tm * h_pad * 4]
    if has_drop:
        in_specs.append(pl.BlockSpec((tm, h_pad), lambda i: (i, 0)))
        args.append(drop_u)
        blocks.append(tm * h_pad * 4)

    return pl.pallas_call(
        _make_aggregate_kernel(relu, drop_p if has_drop else 0.0),
        grid=grid,
        in_specs=in_specs,
        out_specs=pl.BlockSpec((tm, h_pad), lambda i: (i, 0)),
        out_shape=jax.ShapeDtypeStruct((n_pad, h_pad), jnp.float32),
        compiler_params=pltpu.CompilerParams(
            dimension_semantics=("parallel",),
            vmem_limit_bytes=_vmem_limit(blocks)),
    )(*args)


# ---------------------------------------------------------------------------
# module forward
# ---------------------------------------------------------------------------
def dense_gcn_net(x, adj, w1, b1, w2, b2, *, p=0.5, training=True,
                  dropout_key=None):
    x = jnp.asarray(x, jnp.float32)
    adj = jnp.asarray(adj, jnp.float32)
    w1 = jnp.asarray(w1, jnp.float32)
    w2 = jnp.asarray(w2, jnp.float32)
    b1 = jnp.asarray(b1, jnp.float32).reshape(1, -1)
    b2 = jnp.asarray(b2, jnp.float32).reshape(1, -1)

    n, d_in = x.shape
    h = w1.shape[1]
    d_out = w2.shape[1]

    tm = _choose_row_tile(n)
    n_pad = _round_up(n, tm)
    d_pad = _round_up(d_in, LANE)
    h_pad = _round_up(h, LANE)
    o_pad = _round_up(d_out, LANE)

    xp = _pad2d(x, n_pad, d_pad)
    adjp = _pad2d(adj, n_pad, n_pad).astype(jnp.bfloat16)
    w1p = _pad2d(w1, d_pad, h_pad)
    w2p = _pad2d(w2, h_pad, o_pad)
    b1p = _pad2d(b1, 1, h_pad)
    b2p = _pad2d(b2, 1, o_pad)

    p = float(p)
    use_dropout = bool(training) and p > 0.0
    drop_u = None
    if use_dropout:
        if dropout_key is None:
            dropout_key = jax.random.PRNGKey(0)
        drop_u = jax.random.uniform(dropout_key, (n_pad, h_pad), jnp.float32)

    # ---- layer 1: x1 = dropout(relu(adj @ (x @ W1) + b1)) ------------------
    s1 = _support_matmul(xp, w1p, tm)
    x1p = _aggregate(adjp, s1, b1p, tm, relu=True,
                     drop_u=drop_u, drop_p=p if use_dropout else 0.0)

    # ---- layer 2: x2 = adj @ (x1 @ W2) + b2 ---------------------------------
    s2 = _support_matmul(x1p, w2p, tm)
    x2p = _aggregate(adjp, s2, b2p, tm, relu=False)

    return x1p[:n, :h], x2p[:n, :d_out]


# ---------------------------------------------------------------------------
if __name__ == "__main__":
    key = jax.random.PRNGKey(0)
    N, D_IN, H, D_OUT = 16, 8, 32, 4
    k = jax.random.split(key, 7)

    # inputs
    x = jax.random.normal(k[0], (N, D_IN), jnp.float32)
    a = jax.random.uniform(k[1], (N, N), jnp.float32)
    adj = 0.5 * (a + a.T)                               # symmetric dense "adjacency"
    adj = adj / jnp.sum(adj, axis=1, keepdims=True)     # row-normalized

    # deterministic parameter init mirroring DenseGCN.reset_parameters()
    def xavier_uniform(kk, fan_in, fan_out):
        bound = math.sqrt(6.0 / (fan_in + fan_out))
        return jax.random.uniform(kk, (fan_in, fan_out), jnp.float32, -bound, bound)

    w1 = xavier_uniform(k[2], D_IN, H)
    b1 = jax.random.uniform(k[3], (H,), jnp.float32,
                            -1.0 / math.sqrt(D_IN), 1.0 / math.sqrt(D_IN))
    w2 = xavier_uniform(k[4], H, D_OUT)
    b2 = jax.random.uniform(k[5], (D_OUT,), jnp.float32,
                            -1.0 / math.sqrt(H), 1.0 / math.sqrt(H))

    # training-mode forward (dropout active, like a freshly-constructed nn.Module)
    x1t, x2t = dense_gcn_net(x, adj, w1, b1, w2, b2, p=0.5, training=True,
                             dropout_key=k[6])
    jax.block_until_ready((x1t, x2t))
    assert x1t.shape == (N, H) and x2t.shape == (N, D_OUT)
    assert bool(jnp.all(jnp.isfinite(x1t))) and bool(jnp.all(jnp.isfinite(x2t)))
    # layer-2 consistency against the (post-dropout) x1 the kernel produced
    ref_x2t = adj @ (x1t @ w2) + b2
    assert jnp.allclose(x2t, ref_x2t, rtol=2e-2, atol=2e-2)

    # eval-mode forward vs. pure-JAX f32 reference (dropout = identity)
    x1e, x2e = dense_gcn_net(x, adj, w1, b1, w2, b2, p=0.5, training=False)
    jax.block_until_ready((x1e, x2e))
    ref_x1 = jnp.maximum(adj @ (x @ w1) + b1, 0.0)
    ref_x2 = adj @ (ref_x1 @ w2) + b2
    assert jnp.allclose(x1e, ref_x1, rtol=2e-2, atol=2e-2)
    assert jnp.allclose(x2e, ref_x2, rtol=2e-2, atol=2e-2)

    print("KERNEL_OK")
</pallas_src>

<mosaic_0001>
module attributes {stable_mosaic.version = 11 : i64} {
  func.func @_support_kernel(%arg0: i32, %arg1: memref<16x128xf32, #tpu.memory_space<vmem>>, %arg2: memref<128x128xf32, #tpu.memory_space<vmem>>, %arg3: memref<16x128xbf16, #tpu.memory_space<vmem>>) attributes {dimension_semantics = [#tpu.dimension_semantics<parallel>], iteration_bounds = array<i64: 1>, scalar_prefetch = 0 : i64, scratch_operands = 0 : i64, tpu.core_type = #tpu.core_type<tc>, window_params = [{transform_indices = @transform_0, window_bounds = array<i64: 16, 128>}, {pipeline_mode = #tpu.pipeline_mode<synchronous>, transform_indices = @transform_1, window_bounds = array<i64: 128, 128>}, {transform_indices = @transform_2, window_bounds = array<i64: 16, 128>}]} {
    %c0 = arith.constant 0 : index
    %c0_0 = arith.constant 0 : index
    %0 = vector.load %arg1[%c0, %c0_0] : memref<16x128xf32, #tpu.memory_space<vmem>>, vector<16x128xf32>
    %c0_1 = arith.constant 0 : index
    %c0_2 = arith.constant 0 : index
    %1 = vector.load %arg2[%c0_1, %c0_2] : memref<128x128xf32, #tpu.memory_space<vmem>>, vector<128x128xf32>
    %cst = arith.constant dense<0.000000e+00> : vector<16x128xf32>
    %2 = tpu.matmul %0, %1, %cst {dimension_numbers = #tpu.dot_dimension_numbers<[1], [0], [0], [1], [0, 0, 1, 1], [], []>} : vector<16x128xf32>, vector<128x128xf32>, vector<16x128xf32> -> vector<16x128xf32>
    %3 = arith.truncf %2 : vector<16x128xf32> to vector<16x128xbf16>
    %c0_3 = arith.constant 0 : index
    %c0_4 = arith.constant 0 : index
    %4 = vector.load %arg3[%c0_3, %c0_4] : memref<16x128xbf16, #tpu.memory_space<vmem>>, vector<16x128xbf16>
    tpu.vector_store %arg3[%c0_3, %c0_4], %3 {strides = array<i32>} : memref<16x128xbf16, #tpu.memory_space<vmem>>, vector<16x128xbf16>,
    return
  }
  func.func @transform_0(%arg0: i32) -> (i32, i32) {
    %c0_i32 = arith.constant 0 : i32
    %c0_i32_0 = arith.constant 0 : i32
    return %arg0, %c0_i32 : i32, i32
  }
  func.func @transform_1(%arg0: i32) -> (i32, i32) {
    %c0_i32 = arith.constant 0 : i32
    %c0_i32_0 = arith.constant 0 : i32
    %c0_i32_1 = arith.constant 0 : i32
    return %c0_i32, %c0_i32_0 : i32, i32
  }
  func.func @transform_2(%arg0: i32) -> (i32, i32) {
    %c0_i32 = arith.constant 0 : i32
    %c0_i32_0 = arith.constant 0 : i32
    return %arg0, %c0_i32 : i32, i32
  }
}

</mosaic_0001>

<bundles_post_ra>
// kernel: tpu_custom_call.1
= control target key start
LH: loop header
LB: loop body
LE: loop exit
PB: predicated region body
PF: predicated region fallthrough
CT: control target
= control target key end

     0   :  { %7 = vsyncpa [#allocation3], 0  ;;  %s327_s0 = inlined_call_operand.hbm [shape: f32[16,128], index: 0, kind: input, shape index: {}]   ;;  %s328_s1 = inlined_call_operand.hbm [shape: f32[128,128], index: 1, kind: input, shape index: {}]   ;;  %s329_s2 = inlined_call_operand.hbm [shape: bf16[16,128], index: 2, kind: output, shape index: {}]  }
   0x1   :  { %8 = vsyncpa [#allocation6], 0 }
   0x2   :  { %9 = vsyncpa [#allocation4], 0  ;;  %s296_s9 = smov [#allocation2]  }
   0x3   :  { %s15_s10 = sshll.u32 %s296_s9, 4  ;;  %s16_s10 = int_to_ptr.vmem [resolvable:$true] %s15_s10 }
   0x4   :  { %s238_s11 = scalar_lea.vmem %s16_s10, 256  ;;  %p243_p1 = scmp.lt.s32.totalorder %s16_s10, %s16_s10 }
   0x5   :  { %p239_p0 = scmp.ne.s32.totalorder %s16_s10, %s238_s11  ;;  %p244_p2 = scmp.lt.s32.totalorder %s238_s11, %s238_s11 }
   0x7   :  { %p245_p3 = por %p244_p2, %p243_p1 }
   0x9   :  { %p246_p4 = pnand %p245_p3, %p239_p0 }
   0xb   :  { %249 = shalt.err (!%p246_p4)
}
   0xc   :  { %s297_s12 = smov 128   ;;  %s298_s13 = smov 8  }
   0xd   :  { %21 = dma.hbm_to_vmem [thread:$0]  %s327_s0, 256, %s16_s10, [#allocation3], %s297_s12, %s297_s12, %s298_s13  }
   0xe   :  { %s299_s16 = smov [#allocation5]  }
   0xf   :  { %s27_s17 = sshll.u32 %s299_s16, 4  ;;  %s28_s17 = int_to_ptr.vmem [resolvable:$true] %s27_s17 }
  0x10   :  { %s258_s18 = scalar_lea.vmem %s28_s17, 2048  ;;  %p263_p6 = scmp.lt.s32.totalorder %s28_s17, %s28_s17 }
  0x11   :  { %p259_p5 = scmp.ne.s32.totalorder %s28_s17, %s258_s18  ;;  %p264_p7 = scmp.lt.s32.totalorder %s258_s18, %s258_s18 }
  0x13   :  { %p265_p8 = por %p264_p7, %p263_p6 }
  0x15   :  { %p266_p9 = pnand %p265_p8, %p259_p5 }
  0x17   :  { %269 = shalt.err (!%p266_p9)
}
  0x18   :  { %33 = dma.hbm_to_vmem [thread:$0]  %s328_s1, 2048, %s28_s17, [#allocation6], %s297_s12, %s297_s12, %s298_s13  }
  0x19   :  { %290 = dma.done.wait [#allocation3], 256  }
  0x1a   :  { %291 = vsyncadd [#allocation3], 4294967040 }
  0x1b   :  { %292 = dma.done.wait [#allocation6], 2048  }
  0x1c   :  { %293 = vsyncadd [#allocation6], 4294965248  ;;  %v57_v0 = vld [vmem:[#allocation5 + $0x78] sm:$0xff]  ;;  %v56_v1 = vld [vmem:[#allocation5 + $0x70] sm:$0xff]  ;;  %s300_s0 = smov [#allocation7]  }
  0x1d   :  { %188 = vmatprep.subr.mxu0 %v57_v0  ;;  %v55_v2 = vld [vmem:[#allocation5 + $0x68] sm:$0xff]  ;;  %v54_v3 = vld [vmem:[#allocation5 + $0x60] sm:$0xff]  ;;  %v40_v4 = vld [vmem:[#allocation2] sm:$0xff]  ;;  %s148_s1 = sshll.u32 %s300_s0, 4  ;;  %s149_s1 = int_to_ptr.vmem [resolvable:$true] %s148_s1 }
  0x1e   :  { %189 = vmatpush3.msra.mxu0 %v57_v0  ;;  %v53_v5 = vld [vmem:[#allocation5 + $0x58] sm:$0xff]  ;;  %220 = vmatprep.mubr.f32.mxu0 %v40_v4  ;;  %v52_v6 = vld [vmem:[#allocation5 + $0x50] sm:$0xff]  ;;  %v51_v7 = vld [vmem:[#allocation5 + $0x48] sm:$0xff]  ;;  %s270_s21 = scalar_lea.vmem %s149_s1, 128  ;;  %p275_p11 = scmp.lt.s32.totalorder %s149_s1, %s149_s1 }
  0x1f   :  { %190 = vmatprep.subr.mxu0 %v56_v1  ;;  %v50_v8 = vld [vmem:[#allocation5 + $0x40] sm:$0xff]  ;;  %v49_v9 = vld [vmem:[#allocation5 + $0x38] sm:$0xff]  ;;  %v48_v10 = vld [vmem:[#allocation5 + $0x30] sm:$0xff]  ;;  %p271_p10 = scmp.ne.s32.totalorder %s149_s1, %s270_s21  ;;  %p276_p12 = scmp.lt.s32.totalorder %s270_s21, %s270_s21 }
  0x20   :  { %191 = vmatpush3.msra.mxu0 %v56_v1  ;;  %v47_v11 = vld [vmem:[#allocation5 + $0x28] sm:$0xff]  ;;  %v46_v12 = vld [vmem:[#allocation5 + $0x20] sm:$0xff]  ;;  %v45_v13 = vld [vmem:[#allocation5 + $0x18] sm:$0xff] }
  0x21   :  { %192 = vmatprep.subr.mxu0 %v55_v2  ;;  %v44_v14 = vld [vmem:[#allocation5 + $0x10] sm:$0xff]  ;;  %v43_v15 = vld [vmem:[#allocation5 + $0x8] sm:$0xff]  ;;  %v42_v16 = vld [vmem:[#allocation5] sm:$0xff]  ;;  %p277_p13 = por %p276_p12, %p275_p11 }
  0x22   :  { %193 = vmatpush3.msra.mxu0 %v55_v2  ;;  %v41_v17 = vld [vmem:[#allocation2 + $0x8] sm:$0xff] }
  0x23   :  { %194 = vmatprep.subr.mxu0 %v54_v3  ;;  %p278_p0 = pnand %p277_p13, %p271_p10 }
  0x24   :  { %195 = vmatpush3.msra.mxu0 %v54_v3 }
  0x25   :  { %196 = vmatprep.subr.mxu0 %v53_v5 }
  0x26   :  { %197 = vmatpush3.msra.mxu0 %v53_v5 }
  0x27   :  { %198 = vmatprep.subr.mxu0 %v52_v6 }
  0x28   :  { %199 = vmatpush3.msra.mxu0 %v52_v6 }
  0x29   :  { %200 = vmatprep.subr.mxu0 %v51_v7 }
  0x2a   :  { %201 = vmatpush3.msra.mxu0 %v51_v7 }
  0x2b   :  { %202 = vmatprep.subr.mxu0 %v50_v8 }
  0x2c   :  { %203 = vmatpush3.msra.mxu0 %v50_v8 }
  0x2d   :  { %204 = vmatprep.subr.mxu0 %v49_v9 }
  0x2e   :  { %205 = vmatpush3.msra.mxu0 %v49_v9 }
  0x2f   :  { %206 = vmatprep.subr.mxu0 %v48_v10 }
  0x30   :  { %207 = vmatpush3.msra.mxu0 %v48_v10 }
  0x31   :  { %208 = vmatprep.subr.mxu0 %v47_v11 }
  0x32   :  { %209 = vmatpush3.msra.mxu0 %v47_v11 }
  0x33   :  { %210 = vmatprep.subr.mxu0 %v46_v12 }
  0x34   :  { %211 = vmatpush3.msra.mxu0 %v46_v12 }
  0x35   :  { %212 = vmatprep.subr.mxu0 %v45_v13 }
  0x36   :  { %213 = vmatpush3.msra.mxu0 %v45_v13 }
  0x37   :  { %214 = vmatprep.subr.mxu0 %v44_v14 }
  0x38   :  { %215 = vmatpush3.msra.mxu0 %v44_v14 }
  0x39   :  { %216 = vmatprep.subr.mxu0 %v43_v15 }
  0x3a   :  { %217 = vmatpush3.msra.mxu0 %v43_v15 }
  0x3b   :  { %218 = vmatprep.subr.mxu0 %v42_v16 }
  0x3c   :  { %219 = vmatpush3.msra.mxu0 %v42_v16 }
  0x3d   :  { %221 = vmatmul.mubr.f32.vlgmr.msra.gmra.mxu0 %v41_v17 }
  0xfd   :  { %v222_v18 = vpop.f32.mrf.mxu0 }
  0xff   :  { %v124_v19 = vpop.f32.mrf.mxu0 }
 0x100   :  { %v168_v20 = vpack.c.bf16 %v222_v18, %v124_v19 }
 0x102   :  { %169 = vst [vmem:[#allocation7] sm:$0xff] %v168_v20  }
 0x103   :  { %281 = shalt.err (!%p278_p0)
}
 0x104   :  { %s301_s22 = smov 64   ;;  %s302_s23 = smov 4  }
 0x105   :  { %154 = dma.vmem_to_hbm [thread:$0]  %s149_s1, 128, %s329_s2, [#allocation4], %s301_s22, %s301_s22, %s302_s23  }
 0x106   :  { %294 = dma.done.wait [#allocation4], 128  }
 0x107   :  { %295 = vsyncadd [#allocation4], 4294967168 }
 0x108   :  { %158 = vsyncpa [#allocation3], 1 }
 0x109   :  { %159 = vsyncpa [#allocation6], 1 }
 0x10a   :  { %160 = vsyncpa [#allocation4], 1 }

</bundles_post_ra>
